<compile_context>
chip_gen: v6e
topology: v6e:2x2x1
jax: 0.10.0
libtpu: 0.0.40
codegen_flags: <defaults>
</compile_context>

<pallas_src>
import jax
import jax.numpy as jnp
from jax import lax
from jax.experimental import pallas as pl
from jax.experimental.pallas import tpu as pltpu

B, T, D, V = 2, 8, 32, 64           # batch, seq, hidden, vocab (module sizes)
D_PAD, V_PAD = 128, 128             # lane-dense padded sizes
NEG = -1e30                         # "minus infinity" bias for padded vocab cols

_VMEM = pltpu.MemorySpace.VMEM
_SMEM = pltpu.MemorySpace.SMEM


# --------------------------------------------------------------------------
# Shared kernel body: decay recurrence over T into VMEM scratch, then ONE
# batched LM-head matmul (bf16 operands, f32 accumulate).
# --------------------------------------------------------------------------
def _recurrence_and_head(x_ref, h0_ref, a_ref, w_ref, b_ref, hs_ref):
    # x_ref: (B, T, Dp) f32   h0_ref: (B, Dp)   a_ref: (1, Dp)
    # w_ref: (Dp, Vp)         b_ref: (1, Vp)    hs_ref: VMEM scratch (B, T, Dp)
    a = a_ref[...]
    h = h0_ref[...]
    n_t = x_ref.shape[1]
    for t in range(n_t):                 # T is static & small -> unrolled;
        h = a * h + x_ref[:, t, :]       # live ranges bounded by scratch writes
        hs_ref[:, t, :] = h
    bs, ts, dp = hs_ref.shape
    hs_flat = hs_ref[...].reshape(bs * ts, dp)               # (B*T, Dp)
    # Single MXU matmul for all timesteps; bf16 operands, f32 accumulation.
    lg = jnp.dot(hs_flat.astype(jnp.bfloat16),
                 w_ref[...].astype(jnp.bfloat16),
                 preferred_element_type=jnp.float32) + b_ref[...]   # (B*T, Vp)
    return lg, h


# --------------------------------------------------------------------------
# Fused kernel: base-model forward + shifted, masked cross-entropy
# (MemoryCell.process_output), logits stay in VMEM.
# --------------------------------------------------------------------------
def _model_ce_kernel(x_ref, h0_ref, a_ref, w_ref, b_ref, lab_ref, msk_ref,
                     logits_ref, hnew_ref, loss_ref, hs_ref):
    lg, h = _recurrence_and_head(x_ref, h0_ref, a_ref, w_ref, b_ref, hs_ref)
    logits_ref[...] = lg.reshape(logits_ref.shape)           # one lane-dense store
    hnew_ref[...] = h

    # Shifted/masked CE: lab_ref/msk_ref are already shifted so row (b,t)
    # pairs logits[b,t] with labels[b,t+1], weight labels_mask[b,t] (0 at t=T-1).
    # All softmax math in f32 (max-stabilized LSE); padded vocab columns hold
    # -1e30 so exp() underflows to exactly 0 and they never win the max.
    m = jnp.max(lg, axis=-1, keepdims=True)                          # (B*T, 1)
    lse = jnp.log(jnp.sum(jnp.exp(lg - m), axis=-1, keepdims=True)) + m
    col = lax.broadcasted_iota(jnp.int32, lg.shape, 1)               # (B*T, Vp)
    tgt = jnp.sum(jnp.where(col == lab_ref[...], lg, 0.0),
                  axis=-1, keepdims=True)                            # (B*T, 1)
    nll = lse - tgt
    w = msk_ref[...]
    s_w = jnp.sum(w)
    denom = jnp.where(s_w > 0.0, s_w, 1.0)       # guard: empty mask -> 0, not NaN
    loss_ref[0, 0] = jnp.sum(nll * w) / denom


# Logits-only kernel (labels=None path).
def _model_kernel(x_ref, h0_ref, a_ref, w_ref, b_ref,
                  logits_ref, hnew_ref, hs_ref):
    lg, h = _recurrence_and_head(x_ref, h0_ref, a_ref, w_ref, b_ref, hs_ref)
    logits_ref[...] = lg.reshape(logits_ref.shape)
    hnew_ref[...] = h


# --------------------------------------------------------------------------
# pallas_call wrappers (single invocation, whole arrays resident in VMEM;
# scalar loss lands in SMEM).
# --------------------------------------------------------------------------
def run_model_ce(x_emb, h0, decay, w_head, b_head, flat_labels, flat_mask):
    return pl.pallas_call(
        _model_ce_kernel,
        out_shape=(
            jax.ShapeDtypeStruct((B, T, V_PAD), jnp.float32),   # logits (padded V)
            jax.ShapeDtypeStruct((B, D_PAD), jnp.float32),      # new memory state
            jax.ShapeDtypeStruct((1, 1), jnp.float32),          # scalar CE loss
        ),
        in_specs=[pl.BlockSpec(memory_space=_VMEM)] * 7,
        out_specs=(
            pl.BlockSpec(memory_space=_VMEM),
            pl.BlockSpec(memory_space=_VMEM),
            pl.BlockSpec(memory_space=_SMEM),
        ),
        scratch_shapes=[pltpu.VMEM((B, T, D_PAD), jnp.float32)],
    )(x_emb, h0, decay, w_head, b_head, flat_labels, flat_mask)


def run_model(x_emb, h0, decay, w_head, b_head):
    return pl.pallas_call(
        _model_kernel,
        out_shape=(
            jax.ShapeDtypeStruct((B, T, V_PAD), jnp.float32),
            jax.ShapeDtypeStruct((B, D_PAD), jnp.float32),
        ),
        in_specs=[pl.BlockSpec(memory_space=_VMEM)] * 5,
        out_specs=(
            pl.BlockSpec(memory_space=_VMEM),
            pl.BlockSpec(memory_space=_VMEM),
        ),
        scratch_shapes=[pltpu.VMEM((B, T, D_PAD), jnp.float32)],
    )(x_emb, h0, decay, w_head, b_head)


# --------------------------------------------------------------------------
# MemoryCell (JAX/Pallas version)
# --------------------------------------------------------------------------
class MemoryCellPallas:
    def __init__(self, params):
        # Pad parameters to lane-dense shapes once, at construction time.
        self.emb_p = jnp.pad(params["emb"], ((0, 0), (0, D_PAD - D)))        # (V, Dp)
        self.decay_p = jnp.pad(params["decay"], ((0, 0), (0, D_PAD - D)))    # (1, Dp)
        self.w_p = jnp.pad(params["w_head"], ((0, D_PAD - D), (0, V_PAD - V)))
        # Padded vocab columns get -1e30 bias so softmax/CE ignores them.
        self.b_p = jnp.pad(params["b_head"], ((0, 0), (0, V_PAD - V)),
                           constant_values=NEG)

    def forward(self, input_ids, memory_state=None, labels=None, labels_mask=None):
        bsz, seq = input_ids.shape
        # process_input: forward input_ids + cache_params (memory_state).
        # Embedding gather kept as plain-JAX glue (data-dependent row gather);
        # the recurrence + LM-head + CE hot path is all inside the kernel.
        x_emb = self.emb_p[input_ids]                                  # (B, T, Dp)
        if memory_state is None:
            h0 = jnp.zeros((bsz, D_PAD), jnp.float32)
        else:
            h0 = jnp.pad(memory_state,
                         ((0, 0), (0, D_PAD - memory_state.shape[-1])))

        if labels is None:
            logits_p, h_new = run_model(x_emb, h0, self.decay_p, self.w_p, self.b_p)
            return {"logits": logits_p[..., :V]}, h_new[:, :D]

        # process_output: shift-by-one CE with optional labels_mask.
        # Tiny int/bool shift done wrapper-side (B*T ints); logits are NOT
        # sliced/reshaped wrapper-side anymore — CE is fused into the kernel.
        lab = labels.astype(jnp.int32)
        lab_shift = jnp.concatenate(
            [lab[:, 1:], jnp.zeros((bsz, 1), jnp.int32)], axis=1)      # (B, T)
        if labels_mask is not None:
            w_mask = labels_mask.astype(jnp.float32)
        else:
            w_mask = jnp.ones((bsz, seq), jnp.float32)
        w_mask = jnp.concatenate(
            [w_mask[:, :seq - 1], jnp.zeros((bsz, 1), jnp.float32)], axis=1)
        flat_lab = lab_shift.reshape(bsz * seq, 1)
        flat_w = w_mask.reshape(bsz * seq, 1)

        logits_p, h_new, loss = run_model_ce(
            x_emb, h0, self.decay_p, self.w_p, self.b_p, flat_lab, flat_w)
        out = {"logits": logits_p[..., :V], "ce_loss": loss[0, 0]}
        return out, h_new[:, :D]

    # TODO(synk): MemoryCell.generate() (autoregressive decode loop) is not
    # implemented — only the forward pass is covered here.


# --------------------------------------------------------------------------
# Plain-JAX reference (same numerics: f32 recurrence, bf16 MXU operands with
# f32 accumulation, f32 softmax/CE).
# --------------------------------------------------------------------------
def ref_forward(params, input_ids, memory_state, labels, labels_mask):
    x = params["emb"][input_ids]
    h = memory_state
    hs = []
    for t in range(T):
        h = params["decay"][0] * h + x[:, t, :]
        hs.append(h)
    hs = jnp.stack(hs, axis=1)                                        # (B, T, D)
    logits = jnp.dot(hs.astype(jnp.bfloat16),
                     params["w_head"].astype(jnp.bfloat16),
                     preferred_element_type=jnp.float32) + params["b_head"][0]
    sl = logits[:, :-1, :].reshape(-1, V)
    lb = labels[:, 1:].reshape(-1)
    msk = labels_mask[:, :-1].reshape(-1).astype(jnp.float32)
    logp = jax.nn.log_softmax(sl, axis=-1)
    nll = -logp[jnp.arange(sl.shape[0]), lb]
    loss = jnp.sum(nll * msk) / jnp.sum(msk)
    return logits, loss, h


if __name__ == "__main__":
    key = jax.random.PRNGKey(0)
    k1, k2, k3, k4, k5 = jax.random.split(key, 5)

    params = {
        "emb": jax.random.normal(k1, (V, D), jnp.float32) * 0.1,
        "decay": jax.nn.sigmoid(jax.random.normal(k2, (1, D), jnp.float32)),
        "w_head": jax.random.normal(k3, (D, V), jnp.float32) * 0.1,
        "b_head": jnp.zeros((1, V), jnp.float32),
    }
    cell = MemoryCellPallas(params)

    input_ids = jax.random.randint(k4, (B, T), 0, V, dtype=jnp.int32)
    labels = input_ids
    labels_mask = jnp.ones((B, T), dtype=bool).at[1, 0].set(False)
    memory_state = jax.random.normal(k5, (B, D), jnp.float32) * 0.1

    # With labels (fused CE path).
    out, state = cell.forward(input_ids, memory_state=memory_state,
                              labels=labels, labels_mask=labels_mask)
    jax.block_until_ready((out["logits"], out["ce_loss"], state))

    # Without labels (logits-only path).
    out_nl, state_nl = cell.forward(input_ids, memory_state=memory_state)
    jax.block_until_ready((out_nl["logits"], state_nl))

    # Verify against plain-JAX reference.
    ref_logits, ref_loss, ref_state = ref_forward(
        params, input_ids, memory_state, labels, labels_mask)
    assert jnp.allclose(out["logits"], ref_logits, atol=1e-3, rtol=1e-3)
    assert jnp.allclose(out["ce_loss"], ref_loss, atol=1e-3, rtol=1e-3)
    assert jnp.allclose(state, ref_state, atol=1e-4, rtol=1e-4)
    assert jnp.allclose(out_nl["logits"], ref_logits, atol=1e-3, rtol=1e-3)
    assert jnp.allclose(state_nl, ref_state, atol=1e-4, rtol=1e-4)

    print("KERNEL_OK")
</pallas_src>

<mosaic_0001>
module attributes {stable_mosaic.version = 11 : i64} {
  func.func @_model_ce_kernel(%arg0: memref<2x8x128xf32, #tpu.memory_space<vmem>>, %arg1: memref<2x128xf32, #tpu.memory_space<vmem>>, %arg2: memref<1x128xf32, #tpu.memory_space<vmem>>, %arg3: memref<128x128xf32, #tpu.memory_space<vmem>>, %arg4: memref<1x128xf32, #tpu.memory_space<vmem>>, %arg5: memref<16x1xi32, #tpu.memory_space<vmem>>, %arg6: memref<16x1xf32, #tpu.memory_space<vmem>>, %arg7: memref<2x8x128xf32, #tpu.memory_space<vmem>>, %arg8: memref<2x128xf32, #tpu.memory_space<vmem>>, %arg9: memref<1x1xf32, #tpu.memory_space<smem>>, %arg10: memref<2x8x128xf32, #tpu.memory_space<vmem>>) attributes {dimension_semantics = [], scalar_prefetch = 0 : i64, scratch_operands = 1 : i64, tpu.core_type = #tpu.core_type<tc>} {
    %c0 = arith.constant 0 : index
    %c0_0 = arith.constant 0 : index
    %0 = vector.load %arg2[%c0, %c0_0] : memref<1x128xf32, #tpu.memory_space<vmem>>, vector<1x128xf32>
    %c0_1 = arith.constant 0 : index
    %c0_2 = arith.constant 0 : index
    %1 = vector.load %arg1[%c0_1, %c0_2] : memref<2x128xf32, #tpu.memory_space<vmem>>, vector<2x128xf32>
    %2 = vector.broadcast %0 : vector<1x128xf32> to vector<2x128xf32>
    %3 = arith.mulf %2, %1 : vector<2x128xf32>
    %c0_3 = arith.constant 0 : index
    %c0_4 = arith.constant 0 : index
    %c0_5 = arith.constant 0 : index
    %4 = vector.load %arg0[%c0_3, %c0_4, %c0_5] : memref<2x8x128xf32, #tpu.memory_space<vmem>>, vector<2x1x128xf32>
    %5 = vector.shape_cast %4 : vector<2x1x128xf32> to vector<2x128xf32>
    %6 = arith.addf %3, %5 : vector<2x128xf32>
    %c0_6 = arith.constant 0 : index
    %c0_7 = arith.constant 0 : index
    %c0_8 = arith.constant 0 : index
    %7 = vector.load %arg10[%c0_6, %c0_7, %c0_8] : memref<2x8x128xf32, #tpu.memory_space<vmem>>, vector<2x1x128xf32>
    %8 = vector.shape_cast %7 : vector<2x1x128xf32> to vector<2x128xf32>
    %9 = vector.shape_cast %6 : vector<2x128xf32> to vector<2x1x128xf32>
    tpu.vector_store %arg10[%c0_6, %c0_7, %c0_8], %9 {strides = array<i32>} : memref<2x8x128xf32, #tpu.memory_space<vmem>>, vector<2x1x128xf32>,
    %10 = vector.broadcast %0 : vector<1x128xf32> to vector<2x128xf32>
    %11 = arith.mulf %10, %6 : vector<2x128xf32>
    %c0_9 = arith.constant 0 : index
    %c1 = arith.constant 1 : index
    %c0_10 = arith.constant 0 : index
    %12 = vector.load %arg0[%c0_9, %c1, %c0_10] : memref<2x8x128xf32, #tpu.memory_space<vmem>>, vector<2x1x128xf32>
    %13 = vector.shape_cast %12 : vector<2x1x128xf32> to vector<2x128xf32>
    %14 = arith.addf %11, %13 : vector<2x128xf32>
    %c0_11 = arith.constant 0 : index
    %c1_12 = arith.constant 1 : index
    %c0_13 = arith.constant 0 : index
    %15 = vector.load %arg10[%c0_11, %c1_12, %c0_13] : memref<2x8x128xf32, #tpu.memory_space<vmem>>, vector<2x1x128xf32>
    %16 = vector.shape_cast %15 : vector<2x1x128xf32> to vector<2x128xf32>
    %17 = vector.shape_cast %14 : vector<2x128xf32> to vector<2x1x128xf32>
    tpu.vector_store %arg10[%c0_11, %c1_12, %c0_13], %17 {strides = array<i32>} : memref<2x8x128xf32, #tpu.memory_space<vmem>>, vector<2x1x128xf32>,
    %18 = vector.broadcast %0 : vector<1x128xf32> to vector<2x128xf32>
    %19 = arith.mulf %18, %14 : vector<2x128xf32>
    %c0_14 = arith.constant 0 : index
    %c2 = arith.constant 2 : index
    %c0_15 = arith.constant 0 : index
    %20 = vector.load %arg0[%c0_14, %c2, %c0_15] : memref<2x8x128xf32, #tpu.memory_space<vmem>>, vector<2x1x128xf32>
    %21 = vector.shape_cast %20 : vector<2x1x128xf32> to vector<2x128xf32>
    %22 = arith.addf %19, %21 : vector<2x128xf32>
    %c0_16 = arith.constant 0 : index
    %c2_17 = arith.constant 2 : index
    %c0_18 = arith.constant 0 : index
    %23 = vector.load %arg10[%c0_16, %c2_17, %c0_18] : memref<2x8x128xf32, #tpu.memory_space<vmem>>, vector<2x1x128xf32>
    %24 = vector.shape_cast %23 : vector<2x1x128xf32> to vector<2x128xf32>
    %25 = vector.shape_cast %22 : vector<2x128xf32> to vector<2x1x128xf32>
    tpu.vector_store %arg10[%c0_16, %c2_17, %c0_18], %25 {strides = array<i32>} : memref<2x8x128xf32, #tpu.memory_space<vmem>>, vector<2x1x128xf32>,
    %26 = vector.broadcast %0 : vector<1x128xf32> to vector<2x128xf32>
    %27 = arith.mulf %26, %22 : vector<2x128xf32>
    %c0_19 = arith.constant 0 : index
    %c3 = arith.constant 3 : index
    %c0_20 = arith.constant 0 : index
    %28 = vector.load %arg0[%c0_19, %c3, %c0_20] : memref<2x8x128xf32, #tpu.memory_space<vmem>>, vector<2x1x128xf32>
    %29 = vector.shape_cast %28 : vector<2x1x128xf32> to vector<2x128xf32>
    %30 = arith.addf %27, %29 : vector<2x128xf32>
    %c0_21 = arith.constant 0 : index
    %c3_22 = arith.constant 3 : index
    %c0_23 = arith.constant 0 : index
    %31 = vector.load %arg10[%c0_21, %c3_22, %c0_23] : memref<2x8x128xf32, #tpu.memory_space<vmem>>, vector<2x1x128xf32>
    %32 = vector.shape_cast %31 : vector<2x1x128xf32> to vector<2x128xf32>
    %33 = vector.shape_cast %30 : vector<2x128xf32> to vector<2x1x128xf32>
    tpu.vector_store %arg10[%c0_21, %c3_22, %c0_23], %33 {strides = array<i32>} : memref<2x8x128xf32, #tpu.memory_space<vmem>>, vector<2x1x128xf32>,
    %34 = vector.broadcast %0 : vector<1x128xf32> to vector<2x128xf32>
    %35 = arith.mulf %34, %30 : vector<2x128xf32>
    %c0_24 = arith.constant 0 : index
    %c4 = arith.constant 4 : index
    %c0_25 = arith.constant 0 : index
    %36 = vector.load %arg0[%c0_24, %c4, %c0_25] : memref<2x8x128xf32, #tpu.memory_space<vmem>>, vector<2x1x128xf32>
    %37 = vector.shape_cast %36 : vector<2x1x128xf32> to vector<2x128xf32>
    %38 = arith.addf %35, %37 : vector<2x128xf32>
    %c0_26 = arith.constant 0 : index
    %c4_27 = arith.constant 4 : index
    %c0_28 = arith.constant 0 : index
    %39 = vector.load %arg10[%c0_26, %c4_27, %c0_28] : memref<2x8x128xf32, #tpu.memory_space<vmem>>, vector<2x1x128xf32>
    %40 = vector.shape_cast %39 : vector<2x1x128xf32> to vector<2x128xf32>
    %41 = vector.shape_cast %38 : vector<2x128xf32> to vector<2x1x128xf32>
    tpu.vector_store %arg10[%c0_26, %c4_27, %c0_28], %41 {strides = array<i32>} : memref<2x8x128xf32, #tpu.memory_space<vmem>>, vector<2x1x128xf32>,
    %42 = vector.broadcast %0 : vector<1x128xf32> to vector<2x128xf32>
    %43 = arith.mulf %42, %38 : vector<2x128xf32>
    %c0_29 = arith.constant 0 : index
    %c5 = arith.constant 5 : index
    %c0_30 = arith.constant 0 : index
    %44 = vector.load %arg0[%c0_29, %c5, %c0_30] : memref<2x8x128xf32, #tpu.memory_space<vmem>>, vector<2x1x128xf32>
    %45 = vector.shape_cast %44 : vector<2x1x128xf32> to vector<2x128xf32>
    %46 = arith.addf %43, %45 : vector<2x128xf32>
    %c0_31 = arith.constant 0 : index
    %c5_32 = arith.constant 5 : index
    %c0_33 = arith.constant 0 : index
    %47 = vector.load %arg10[%c0_31, %c5_32, %c0_33] : memref<2x8x128xf32, #tpu.memory_space<vmem>>, vector<2x1x128xf32>
    %48 = vector.shape_cast %47 : vector<2x1x128xf32> to vector<2x128xf32>
    %49 = vector.shape_cast %46 : vector<2x128xf32> to vector<2x1x128xf32>
    tpu.vector_store %arg10[%c0_31, %c5_32, %c0_33], %49 {strides = array<i32>} : memref<2x8x128xf32, #tpu.memory_space<vmem>>, vector<2x1x128xf32>,
    %50 = vector.broadcast %0 : vector<1x128xf32> to vector<2x128xf32>
    %51 = arith.mulf %50, %46 : vector<2x128xf32>
    %c0_34 = arith.constant 0 : index
    %c6 = arith.constant 6 : index
    %c0_35 = arith.constant 0 : index
    %52 = vector.load %arg0[%c0_34, %c6, %c0_35] : memref<2x8x128xf32, #tpu.memory_space<vmem>>, vector<2x1x128xf32>
    %53 = vector.shape_cast %52 : vector<2x1x128xf32> to vector<2x128xf32>
    %54 = arith.addf %51, %53 : vector<2x128xf32>
    %c0_36 = arith.constant 0 : index
    %c6_37 = arith.constant 6 : index
    %c0_38 = arith.constant 0 : index
    %55 = vector.load %arg10[%c0_36, %c6_37, %c0_38] : memref<2x8x128xf32, #tpu.memory_space<vmem>>, vector<2x1x128xf32>
    %56 = vector.shape_cast %55 : vector<2x1x128xf32> to vector<2x128xf32>
    %57 = vector.shape_cast %54 : vector<2x128xf32> to vector<2x1x128xf32>
    tpu.vector_store %arg10[%c0_36, %c6_37, %c0_38], %57 {strides = array<i32>} : memref<2x8x128xf32, #tpu.memory_space<vmem>>, vector<2x1x128xf32>,
    %58 = vector.broadcast %0 : vector<1x128xf32> to vector<2x128xf32>
    %59 = arith.mulf %58, %54 : vector<2x128xf32>
    %c0_39 = arith.constant 0 : index
    %c7 = arith.constant 7 : index
    %c0_40 = arith.constant 0 : index
    %60 = vector.load %arg0[%c0_39, %c7, %c0_40] : memref<2x8x128xf32, #tpu.memory_space<vmem>>, vector<2x1x128xf32>
    %61 = vector.shape_cast %60 : vector<2x1x128xf32> to vector<2x128xf32>
    %62 = arith.addf %59, %61 : vector<2x128xf32>
    %c0_41 = arith.constant 0 : index
    %c7_42 = arith.constant 7 : index
    %c0_43 = arith.constant 0 : index
    %63 = vector.load %arg10[%c0_41, %c7_42, %c0_43] : memref<2x8x128xf32, #tpu.memory_space<vmem>>, vector<2x1x128xf32>
    %64 = vector.shape_cast %63 : vector<2x1x128xf32> to vector<2x128xf32>
    %65 = vector.shape_cast %62 : vector<2x128xf32> to vector<2x1x128xf32>
    tpu.vector_store %arg10[%c0_41, %c7_42, %c0_43], %65 {strides = array<i32>} : memref<2x8x128xf32, #tpu.memory_space<vmem>>, vector<2x1x128xf32>,
    %c0_44 = arith.constant 0 : index
    %c0_45 = arith.constant 0 : index
    %c0_46 = arith.constant 0 : index
    %66 = vector.load %arg10[%c0_44, %c0_45, %c0_46] : memref<2x8x128xf32, #tpu.memory_space<vmem>>, vector<2x8x128xf32>
    %67 = vector.shape_cast %66 : vector<2x8x128xf32> to vector<16x128xf32>
    %68 = arith.truncf %67 : vector<16x128xf32> to vector<16x128xbf16>
    %c0_47 = arith.constant 0 : index
    %c0_48 = arith.constant 0 : index
    %69 = vector.load %arg3[%c0_47, %c0_48] : memref<128x128xf32, #tpu.memory_space<vmem>>, vector<128x128xf32>
    %70 = arith.truncf %69 : vector<128x128xf32> to vector<128x128xbf16>
    %cst = arith.constant dense<0.000000e+00> : vector<16x128xf32>
    %71 = tpu.matmul %68, %70, %cst {dimension_numbers = #tpu.dot_dimension_numbers<[1], [0], [0], [1], [0, 0, 1, 1], [], []>} : vector<16x128xbf16>, vector<128x128xbf16>, vector<16x128xf32> -> vector<16x128xf32>
    %c0_49 = arith.constant 0 : index
    %c0_50 = arith.constant 0 : index
    %72 = vector.load %arg4[%c0_49, %c0_50] : memref<1x128xf32, #tpu.memory_space<vmem>>, vector<1x128xf32>
    %73 = vector.broadcast %72 : vector<1x128xf32> to vector<16x128xf32>
    %74 = arith.addf %71, %73 : vector<16x128xf32>
    %75 = vector.shape_cast %74 : vector<16x128xf32> to vector<2x8x128xf32>
    %c0_51 = arith.constant 0 : index
    %c0_52 = arith.constant 0 : index
    %c0_53 = arith.constant 0 : index
    %76 = vector.load %arg7[%c0_51, %c0_52, %c0_53] : memref<2x8x128xf32, #tpu.memory_space<vmem>>, vector<2x8x128xf32>
    tpu.vector_store %arg7[%c0_51, %c0_52, %c0_53], %75 {strides = array<i32>} : memref<2x8x128xf32, #tpu.memory_space<vmem>>, vector<2x8x128xf32>,
    %c0_54 = arith.constant 0 : index
    %c0_55 = arith.constant 0 : index
    %77 = vector.load %arg8[%c0_54, %c0_55] : memref<2x128xf32, #tpu.memory_space<vmem>>, vector<2x128xf32>
    tpu.vector_store %arg8[%c0_54, %c0_55], %62 {strides = array<i32>} : memref<2x128xf32, #tpu.memory_space<vmem>>, vector<2x128xf32>,
    %cst_56 = arith.constant dense<0xFF800000> : vector<16xf32>
    %78 = vector.multi_reduction <maximumf>, %74, %cst_56 [1] : vector<16x128xf32> to vector<16xf32>
    %79 = vector.shape_cast %78 : vector<16xf32> to vector<16x1xf32>
    %80 = vector.broadcast %79 : vector<16x1xf32> to vector<16x128xf32>
    %81 = arith.subf %74, %80 : vector<16x128xf32>
    %82 = math.exp %81 : vector<16x128xf32>
    %cst_57 = arith.constant dense<0.000000e+00> : vector<16xf32>
    %83 = vector.multi_reduction <add>, %82, %cst_57 [1] : vector<16x128xf32> to vector<16xf32>
    %84 = vector.shape_cast %83 : vector<16xf32> to vector<16x1xf32>
    %85 = math.log %84 : vector<16x1xf32>
    %86 = arith.addf %85, %79 : vector<16x1xf32>
    %87 = tpu.iota {dimensions = array<i32: 1>} : vector<16x128xi32>
    %c0_58 = arith.constant 0 : index
    %c0_59 = arith.constant 0 : index
    %88 = vector.load %arg5[%c0_58, %c0_59] : memref<16x1xi32, #tpu.memory_space<vmem>>, vector<16x1xi32>
    %89 = vector.broadcast %88 : vector<16x1xi32> to vector<16x128xi32>
    %90 = arith.cmpi eq, %87, %89 : vector<16x128xi32>
    %cst_60 = arith.constant 0.000000e+00 : f32
    %91 = vector.broadcast %cst_60 : f32 to vector<16x128xf32>
    %92 = arith.select %90, %74, %91 : vector<16x128xi1>, vector<16x128xf32>
    %cst_61 = arith.constant dense<0.000000e+00> : vector<16xf32>
    %93 = vector.multi_reduction <add>, %92, %cst_61 [1] : vector<16x128xf32> to vector<16xf32>
    %94 = vector.shape_cast %93 : vector<16xf32> to vector<16x1xf32>
    %95 = arith.subf %86, %94 : vector<16x1xf32>
    %c0_62 = arith.constant 0 : index
    %c0_63 = arith.constant 0 : index
    %96 = vector.load %arg6[%c0_62, %c0_63] : memref<16x1xf32, #tpu.memory_space<vmem>>, vector<16x1xf32>
    %97 = vector.shape_cast %96 : vector<16x1xf32> to vector<1x16x1xf32>
    %cst_64 = arith.constant dense<0.000000e+00> : vector<1xf32>
    %98 = vector.multi_reduction <add>, %97, %cst_64 [1, 2] : vector<1x16x1xf32> to vector<1xf32>
    %99 = vector.shape_cast %98 : vector<1xf32> to vector<1x1x1xf32>
    %100 = vector.extract %99[0, 0, 0] : f32 from vector<1x1x1xf32>
    %cst_65 = arith.constant 0.000000e+00 : f32
    %101 = arith.cmpf ogt, %100, %cst_65 : f32
    %cst_66 = arith.constant 1.000000e+00 : f32
    %102 = arith.select %101, %100, %cst_66 : f32
    %103 = arith.mulf %95, %96 : vector<16x1xf32>
    %104 = vector.shape_cast %103 : vector<16x1xf32> to vector<1x16x1xf32>
    %cst_67 = arith.constant dense<0.000000e+00> : vector<1xf32>
    %105 = vector.multi_reduction <add>, %104, %cst_67 [1, 2] : vector<1x16x1xf32> to vector<1xf32>
    %106 = vector.shape_cast %105 : vector<1xf32> to vector<1x1x1xf32>
    %107 = vector.extract %106[0, 0, 0] : f32 from vector<1x1x1xf32>
    %108 = arith.divf %107, %102 : f32
    %c0_68 = arith.constant 0 : index
    %c0_69 = arith.constant 0 : index
    %109 = memref.load %arg9[%c0_68, %c0_69] : memref<1x1xf32, #tpu.memory_space<smem>>
    memref.store %108, %arg9[%c0_68, %c0_69] : memref<1x1xf32, #tpu.memory_space<smem>>
    return
  }
}

</mosaic_0001>

<bundles_post_ra>
// kernel: tpu_custom_call.1
= control target key start
LH: loop header
LB: loop body
LE: loop exit
PB: predicated region body
PF: predicated region fallthrough
CT: control target
= control target key end

     0   :  { %15 = vsyncpa [#allocation4], 0  ;;  %s884_s0 = inlined_call_operand.vmem [shape: f32[2,8,128], index: 0, kind: input, shape index: {}]   ;;  %s885_s1 = inlined_call_operand.vmem [shape: f32[2,128], index: 1, kind: input, shape index: {}]   ;;  %s886_s2 = inlined_call_operand.vmem [shape: f32[1,128], index: 2, kind: input, shape index: {}]   ;;  %s887_s3 = inlined_call_operand.hbm [shape: f32[128,128], index: 3, kind: input, shape index: {}]   ;;  %s888_s4 = inlined_call_operand.vmem [shape: f32[1,128], index: 4, kind: input, shape index: {}]   ;;  %s889_s5 = inlined_call_operand.vmem [shape: s32[16,1], index: 5, kind: input, shape index: {}]   ;;  %s890_s6 = inlined_call_operand.vmem [shape: f32[16,1], index: 6, kind: input, shape index: {}]   ;;  %s891_s7 = inlined_call_operand.hbm [shape: f32[2,8,128], index: 7, kind: output, shape index: {0}]   ;;  %s892_s8 = inlined_call_operand.hbm [shape: f32[2,128], index: 8, kind: output, shape index: {1}]   ;;  %s893_s9 = inlined_call_operand.hbm [shape: f32[1,1], index: 9, kind: output, shape index: {2}]  }
   0x1   :  { %16 = vsyncpa [#allocation5], 0 }
   0x2   :  { %17 = vsyncpa [#allocation9], 0 }
   0x3   :  { %18 = vsyncpa [#allocation6], 0  ;;  %s694_s30 = smov [#allocation3]  }
   0x4   :  { %s30_s10 = sshll.u32 %s694_s30, 4  ;;  %s31_s10 = int_to_ptr.vmem [resolvable:$true] %s30_s10 }
   0x5   :  { %s626_s11 = scalar_lea.vmem %s31_s10, 2048  ;;  %p631_p1 = scmp.lt.s32.totalorder %s31_s10, %s31_s10 }
   0x6   :  { %p627_p0 = scmp.ne.s32.totalorder %s31_s10, %s626_s11  ;;  %p632_p2 = scmp.lt.s32.totalorder %s626_s11, %s626_s11 }
   0x8   :  { %p633_p3 = por %p632_p2, %p631_p1 }
   0xa   :  { %p634_p4 = pnand %p633_p3, %p627_p0 }
   0xc   :  { %637 = shalt.err (!%p634_p4)
}
   0xd   :  { %s695_s12 = smov 128   ;;  %s696_s13 = smov 8  }
   0xe   :  { %36 = dma.hbm_to_vmem [thread:$0]  %s887_s3, 2048, %s31_s10, [#allocation4], %s695_s12, %s695_s12, %s696_s13  }
   0xf   :  { %686 = dma.done.wait [#allocation4], 2048  }
  0x10   :  { %687 = vsyncadd [#allocation4], 4294965248  ;;  %v697_v0 = vmov 0.0   ;;  %vm698_vm0 = vmmov 0   ;;  %v699_v1 = vmov 0   ;;  %v361_v2 = vld [vmem:[#allocation3 + $0x70] sm:$0xff]  ;;  %v69_v7 = vlaneseq }
  0x11   :  { %570 = vmatprep.subr.bf16.mxu0 %v697_v0  ;;  %586 = vmatprep.mubr.msk.bf16.mxu0 %vm698_vm0, %v697_v0  ;;  %v362_v3 = vld [vmem:[#allocation3 + $0x78] sm:$0xff]  ;;  %v359_v4 = vld [vmem:[#allocation3 + $0x60] sm:$0xff]  ;;  %v700_v5 = vmov 1966171168   ;;  %v360_v9 = vld [vmem:[#allocation3 + $0x68] sm:$0xff]  ;;  %vm61_vm1 = vcmask 1041409  }
  0x12   :  { %606 = vset.pattern.permute.xlu1 %v699_v1  ;;  %607 = vset.pattern.permute.xlu0 %v699_v1  ;;  %v67_v6 = vunpack.c.l.s4 %v700_v5  ;;  %v370_v8 = vpack.c.bf16 %v362_v3, %v361_v2  ;;  %v369_v10 = vpack.c.bf16 %v360_v9, %v359_v4  ;;  %v357_v11 = vld [vmem:[#allocation3 + $0x50] sm:$0xff]  ;;  %v358_v12 = vld [vmem:[#allocation3 + $0x58] sm:$0xff]  ;;  %v70_v14 = vshrl.u32 %v69_v7, 7  ;;  %v355_v21 = vld [vmem:[#allocation3 + $0x40] sm:$0xff]  ;;  %s702_s15 = smov [#allocation8]  }
  0x13   :  { %v767_v15 = vld [vmem:[%s886_s2] ss:$0 sm:$0xff]  ;;  %v57_v19 = vld [vmem:[%s884_s0 + $0x8] sm:$0x1]  ;;  %v368_v20 = vpack.c.bf16 %v358_v12, %v357_v11  ;;  %v94_v23 = vld [vmem:[%s884_s0 + $0x9] sm:$0x1] }
  0x14   :  { %571 = vmatpush3.bf16.msra.mxu0 %v370_v8  ;;  %v68_v13 = vunpack.c.0.s8 %v67_v6  ;;  %v48_v16 = vld [vmem:[%s885_s1] sm:$0x3]  ;;  %v60_v22 = vrot.slane %v57_v19, 7  ;;  %v356_v25 = vld [vmem:[#allocation3 + $0x48] sm:$0xff]  ;;  %v97_v28 = vrot.slane %v94_v23, 7  ;;  %v445_v31 = vld [vmem:[%s889_s5 + $0x8] sm:$0xff] }
  0x15   :  { %572 = vmatprep.subr.bf16.mxu0 %v697_v0  ;;  %v55_v17 = vmul.f32 %v767_v15, %v48_v16  ;;  %v56_v18 = vld [vmem:[%s884_s0] sm:$0x1]  ;;  %v93_v27 = vld [vmem:[%s884_s0 + $0x1] sm:$0x1]  ;;  %v130_v29 = vld [vmem:[%s884_s0 + $0xa] sm:$0x1]  ;;  %v367_v33 = vpack.c.bf16 %v356_v25, %v355_v21 }
  0x16   :  { %v444_v24 = vld [vmem:[%s889_s5] sm:$0xff]  ;;  %v786_v26 = vsub.s32 %v68_v13, %v70_v14  ;;  %v62_v30 = vsel %vm61_vm1, %v60_v22, %v56_v18  ;;  %v98_v35 = vsel %vm61_vm1, %v97_v28, %v93_v27  ;;  %v133_v36 = vrot.slane %v130_v29, 7  ;;  %v354_v37 = vld [vmem:[#allocation3 + $0x38] sm:$0xff]  ;;  %v351_v45 = vld [vmem:[#allocation3 + $0x20] sm:$0xff]  ;;  %s517_s3 = sshll.u32 %s702_s15, 4  ;;  %s518_s3 = int_to_ptr.vmem [resolvable:$true] %s517_s3 }
  0x17   :  { %447 = vperm.xlu1 %606, %v444_v24   ;;  %v64_v32 = vadd.f32 %v62_v30, %v55_v17  ;;  %v353_v34 = vld [vmem:[#allocation3 + $0x30] sm:$0xff]  ;;  %v166_v41 = vld [vmem:[%s884_s0 + $0xb] sm:$0x1]  ;;  %v352_v48 = vld [vmem:[#allocation3 + $0x28] sm:$0xff]  ;;  %vm464_vm3 = vcmask 7168  }
  0x18   :  { %573 = vmatpush3.bf16.msra.mxu0 %v369_v10  ;;  %v129_v40 = vld [vmem:[%s884_s0 + $0x2] sm:$0x1]  ;;  %v366_v44 = vpack.c.bf16 %v354_v37, %v353_v34  ;;  %v169_v47 = vrot.slane %v166_v41, 7  ;;  %v165_v51 = vld [vmem:[%s884_s0 + $0x3] sm:$0x1]  ;;  %v365_v55 = vpack.c.bf16 %v352_v48, %v351_v45  ;;  %v350_v59 = vld [vmem:[#allocation3 + $0x18] sm:$0xff] }
  0x19   :  { %574 = vmatprep.subr.bf16.mxu0 %v697_v0  ;;  %v72_v38 = vrot.slane %v64_v32, %v786_v26  ;;  %v92_v39 = vmul.f32 %v767_v15, %v64_v32  ;;  %v134_v46 = vsel %vm61_vm1, %v133_v36, %v129_v40  ;;  %v202_v52 = vld [vmem:[%s884_s0 + $0xc] sm:$0x1]  ;;  %v349_v56 = vld [vmem:[#allocation3 + $0x10] sm:$0xff]  ;;  %v238_v63 = vld [vmem:[%s884_s0 + $0xd] sm:$0x1] }
  0x1a   :  { %v170_v57 = vsel %vm61_vm1, %v169_v47, %v165_v51  ;;  %v205_v58 = vrot.slane %v202_v52, 7  ;;  %v201_v62 = vld [vmem:[%s884_s0 + $0x4] sm:$0x1]  ;;  %v364_v3 = vpack.c.bf16 %v350_v59, %v349_v56  ;;  %v347_v4 = vld [vmem:[#allocation3] sm:$0xff]  ;;  %v241_v6 = vrot.slane %v238_v63, 7  ;;  %v348_v8 = vld [vmem:[#allocation3 + $0x8] sm:$0xff] }
  0x1b   :  { %450 = vperm.xlu1 %606, %v445_v31   ;;  %v73_v42 = vcombine.high %v72_v38, %v72_v38  ;;  %544 = vst.sshfl [vmem:[#allocation2] sm:$0x1 pattern:$0x73625140] %v72_v38  ;;  %v100_v43 = vadd.f32 %v98_v35, %v92_v39  ;;  %v237_v11 = vld [vmem:[%s884_s0 + $0x5] sm:$0x1]  ;;  %v363_v16 = vpack.c.bf16 %v348_v8, %v347_v4 }
  0x1c   :  { %575 = vmatpush3.bf16.msra.mxu0 %v368_v20  ;;  %v206_v5 = vsel %vm61_vm1, %v205_v58, %v201_v62  ;;  %v274_v12 = vld [vmem:[%s884_s0 + $0xe] sm:$0x1]  ;;  %v242_v17 = vsel %vm61_vm1, %v241_v6, %v237_v11  ;;  %v273_v21 = vld [vmem:[%s884_s0 + $0x6] sm:$0x1]  ;;  %v310_v22 = vld [vmem:[%s884_s0 + $0xf] sm:$0x1] }
  0x1d   :  { %576 = vmatprep.subr.bf16.mxu0 %v697_v0  ;;  %545 = vst.sshfl [vmem:[#allocation2 + $0x8] sm:$0x1 pattern:$0x73625140] %v73_v42  ;;  %v108_v49 = vrot.slane %v100_v43, %v786_v26  ;;  %v128_v50 = vmul.f32 %v767_v15, %v100_v43  ;;  %v277_v18 = vrot.slane %v274_v12, 7  ;;  %v463_v58 = vld [vmem:[%s890_s6 + $0x8] sm:$0xff] }
  0x1e   :  { %v309_v29 = vld [vmem:[%s884_s0 + $0x7] sm:$0x1]  ;;  %v560_v42 = vld [vmem:[%s888_s4] ss:$0 sm:$0xff] }
  0x1f   :  { %v109_v53 = vcombine.high %v108_v49, %v108_v49  ;;  %546 = vst.sshfl [vmem:[#allocation2 + $0x1] sm:$0x1 pattern:$0x73625140] %v108_v49  ;;  %v136_v54 = vadd.f32 %v134_v46, %v128_v50  ;;  %v278_v25 = vsel %vm61_vm1, %v277_v18, %v273_v21 }
  0x20   :  { %577 = vmatpush3.bf16.msra.mxu0 %v367_v33 }
  0x21   :  { %578 = vmatprep.subr.bf16.mxu0 %v697_v0  ;;  %547 = vst.sshfl [vmem:[#allocation2 + $0x9] sm:$0x1 pattern:$0x73625140] %v109_v53  ;;  %v144_v60 = vrot.slane %v136_v54, %v786_v26  ;;  %v164_v61 = vmul.f32 %v767_v15, %v136_v54  ;;  %v443_v54 = vand.u32 127, %v69_v7 }
  0x23   :  { %v145_v1 = vcombine.high %v144_v60, %v144_v60  ;;  %548 = vst.sshfl [vmem:[#allocation2 + $0x2] sm:$0x1 pattern:$0x73625140] %v144_v60  ;;  %v172_v2 = vadd.f32 %v170_v57, %v164_v61  ;;  %v462_v57 = vld [vmem:[%s890_s6] sm:$0xff]  ;;  %v466_v61 = vsel %vm464_vm3, %v463_v58, 0.0 }
  0x24   :  { %579 = vmatpush3.bf16.msra.mxu0 %v366_v44  ;;  %v465_v7 = vsel %vm464_vm3, %v462_v57, 0.0  ;;  %s701_s6 = smov [#allocation7]  }
  0x25   :  { %580 = vmatprep.subr.bf16.mxu0 %v697_v0  ;;  %549 = vst.sshfl [vmem:[#allocation2 + $0xa] sm:$0x1 pattern:$0x73625140] %v145_v1  ;;  %v180_v9 = vrot.slane %v172_v2, %v786_v26  ;;  %v200_v10 = vmul.f32 %v767_v15, %v172_v2  ;;  %v467_v63 = vadd.f32 %v466_v61, %v465_v7  ;;  %s504_s5 = sshll.u32 %s701_s6, 4  ;;  %s505_s5 = int_to_ptr.vmem [resolvable:$true] %s504_s5 }
  0x26   :  { %s638_s16 = scalar_lea.vmem %s505_s5, 256  ;;  %p643_p6 = scmp.lt.s32.totalorder %s505_s5, %s505_s5 }
  0x27   :  { %v181_v13 = vcombine.high %v180_v9, %v180_v9  ;;  %550 = vst.sshfl [vmem:[#allocation2 + $0x3] sm:$0x1 pattern:$0x73625140] %v180_v9  ;;  %v208_v14 = vadd.f32 %v206_v5, %v200_v10  ;;  %p639_p5 = scmp.ne.s32.totalorder %s505_s5, %s638_s16  ;;  %p644_p7 = scmp.lt.s32.totalorder %s638_s16, %s638_s16 }
  0x28   :  { %581 = vmatpush3.bf16.msra.mxu0 %v365_v55 }
  0x29   :  { %582 = vmatprep.subr.bf16.mxu0 %v697_v0  ;;  %551 = vst.sshfl [vmem:[#allocation2 + $0xb] sm:$0x1 pattern:$0x73625140] %v181_v13  ;;  %v216_v19 = vrot.slane %v208_v14, %v786_v26  ;;  %v236_v20 = vmul.f32 %v767_v15, %v208_v14  ;;  %p645_p8 = por %p644_p7, %p643_p6 }
  0x2b   :  { %v217_v23 = vcombine.high %v216_v19, %v216_v19  ;;  %552 = vst.sshfl [vmem:[#allocation2 + $0x4] sm:$0x1 pattern:$0x73625140] %v216_v19  ;;  %v244_v24 = vadd.f32 %v242_v17, %v236_v20  ;;  %p646_p9 = pnand %p645_p8, %p639_p5 }
  0x2c   :  { %583 = vmatpush3.bf16.msra.mxu0 %v364_v3 }
  0x2d   :  { %584 = vmatprep.subr.bf16.mxu0 %v697_v0  ;;  %v313_v0 = vrot.slane %v310_v22, 7  ;;  %553 = vst.sshfl [vmem:[#allocation2 + $0xc] sm:$0x1 pattern:$0x73625140] %v217_v23  ;;  %v252_v27 = vrot.slane %v244_v24, %v786_v26  ;;  %v272_v28 = vmul.f32 %v767_v15, %v244_v24 }
  0x2f   :  { %v253_v30 = vcombine.high %v252_v27, %v252_v27  ;;  %554 = vst.sshfl [vmem:[#allocation2 + $0x5] sm:$0x1 pattern:$0x73625140] %v252_v27  ;;  %v280_v31 = vadd.f32 %v278_v25, %v272_v28  ;;  %v314_v32 = vsel %vm61_vm1, %v313_v0, %v309_v29 }
  0x30   :  { %585 = vmatpush3.bf16.msra.mxu0 %v363_v16 }
  0x31   :  { %555 = vst.sshfl [vmem:[#allocation2 + $0xd] sm:$0x1 pattern:$0x73625140] %v253_v30  ;;  %v288_v33 = vrot.slane %v280_v31, %v786_v26  ;;  %v308_v34 = vmul.f32 %v767_v15, %v280_v31 }
  0x33   :  { %v289_v35 = vcombine.high %v288_v33, %v288_v33  ;;  %556 = vst.sshfl [vmem:[#allocation2 + $0x6] sm:$0x1 pattern:$0x73625140] %v288_v33  ;;  %v316_v36 = vadd.f32 %v314_v32, %v308_v34 }
  0x35   :  { %557 = vst.sshfl [vmem:[#allocation2 + $0xe] sm:$0x1 pattern:$0x73625140] %v289_v35  ;;  %v324_v37 = vrot.slane %v316_v36, %v786_v26  ;;  %421 = vst [vmem:[#allocation8] sm:$0x3] %v316_v36 }
  0x37   :  { %v325_v38 = vcombine.high %v324_v37, %v324_v37  ;;  %558 = vst.sshfl [vmem:[#allocation2 + $0x7] sm:$0x1 pattern:$0x73625140] %v324_v37 }
  0x39   :  { %559 = vst.sshfl [vmem:[#allocation2 + $0xf] sm:$0x1 pattern:$0x73625140] %v325_v38 }
  0x3e   :  { %v344_v39 = vld [vmem:[#allocation2] sm:$0xff] }
  0x40   :  { %v345_v40 = vld [vmem:[#allocation2 + $0x8] sm:$0xff] }
  0x41   :  { %v346_v41 = vpack.c.bf16 %v345_v40, %v344_v39 }
  0x43   :  { %587 = vmatmul.mubr.bf16.vlgmr.msra.gmra.mxu0 %v346_v41 }
  0x92   :  { %v448_v53 = vpop.permute.xlu1 %447 }
  0x93   :  { %vm452_vm2 = vcmp.eq.s32.totalorder %v443_v54, %v448_v53 }
  0x96   :  { %v451_v56 = vpop.permute.xlu1 %450 }
  0x97   :  { %vm453_vm4 = vcmp.eq.s32.totalorder %v443_v54, %v451_v56 }
 0x103   :  { %v412_v43 = vpop.f32.mrf.mxu0 }
 0x104   :  { %v413_v15 = vadd.f32 %v560_v42, %v412_v43 }
 0x105   :  { %v588_v44 = vpop.f32.mrf.mxu0 }
 0x106   :  { %419 = vst [vmem:[#allocation7] sm:$0xff] %v413_v15  ;;  %422 = vmax.xlane.f32.xlu0 %v413_v15  ;;  %v454_v60 = vsel %vm452_vm2, %v413_v15, 0.0 }
 0x107   :  { %v415_v45 = vpop.f32.mrf.mxu0 }
 0x108   :  { %v416_v46 = vadd.f32 %v560_v42, %v415_v45 }
 0x109   :  { %v589_v26 = vpop.f32.mrf.mxu0 }
 0x10a   :  { %420 = vst [vmem:[#allocation7 + $0x8] sm:$0xff] %v416_v46  ;;  %424 = vmax.xlane.f32.xlu0 %v416_v46  ;;  %v455_v62 = vsel %vm453_vm4, %v416_v46, 0.0 }
 0x18f   :  { %v423_v47 = vpop.xlane.xlu0 %422 }
 0x190   :  { %v426_v48 = vsub.f32 %v413_v15, %v423_v47 }
 0x192   :  { %v428_v49 = vmul.f32 1.442695, %v426_v48 }
 0x193   :  { %v425_v50 = vpop.xlane.xlu0 %424 }
 0x194   :  { %608 = vpow2.f32 %v428_v49  ;;  %v427_v51 = vsub.f32 %v416_v46, %v425_v50 }
 0x196   :  { %v430_v52 = vmul.f32 1.442695, %v427_v51 }
 0x198   :  { %610 = vpow2.f32 %v430_v52 }
 0x1a1   :  { %v609_v55 = vpop.eup %608 }
 0x1a2   :  { %432 = vadd.xlane.f32.xlu0 %v609_v55 }
 0x1a5   :  { %v611_v59 = vpop.eup %610 }
 0x1a6   :  { %456 = vadd.xlane.f32.xlu0 %v454_v60  ;;  %434 = vadd.xlane.f32.xlu1 %v611_v59 }
 0x1aa   :  { %458 = vadd.xlane.f32.xlu0 %v455_v62 }
 0x1ae   :  { %468 = vadd.xlane.f32.xlu0 %v467_v63 }
 0x22b   :  { %v433_v1 = vpop.xlane.xlu0 %432 }
 0x22c   :  { %612 = vlog2.f32 %v433_v1 }
 0x22f   :  { %v435_v2 = vpop.xlane.xlu1 %434  ;;  %v457_v3 = vpop.xlane.xlu0 %456 }
 0x230   :  { %614 = vlog2.f32 %v435_v2 }
 0x233   :  { %v459_v4 = vpop.xlane.xlu0 %458 }
 0x237   :  { %v469_v5 = vpop.xlane.xlu0 %468 }
 0x238   :  { %v470_v6 = vrot.slane %v469_v5, 4 }
 0x239   :  { %v613_v8 = vpop.eup %612 }
 0x23a   :  { %v437_v9 = vmul.f32 0.6931472, %v613_v8  ;;  %v471_v10 = vadd.f32 %v470_v6, %v469_v5 }
 0x23c   :  { %v440_v11 = vadd.f32 %v437_v9, %v423_v47  ;;  %v472_v12 = vrot.slane %v471_v10, 2 }
 0x23d   :  { %v615_v13 = vpop.eup %614 }
 0x23e   :  { %v439_v14 = vmul.f32 0.6931472, %v615_v13  ;;  %v460_v16 = vsub.f32 %v440_v11, %v457_v3  ;;  %v473_v17 = vadd.f32 %v472_v12, %v471_v10 }
 0x240   :  { %v441_v18 = vadd.f32 %v439_v14, %v425_v50  ;;  %v474_v19 = vrot.slane %v473_v17, 1  ;;  %v479_v20 = vmul.f32 %v462_v57, %v460_v16 }
 0x242   :  { %v461_v21 = vsub.f32 %v441_v18, %v459_v4  ;;  %v475_v22 = vadd.f32 %v474_v19, %v473_v17  ;;  %v481_v24 = vsel %vm464_vm3, %v479_v20, 0.0 }
 0x244   :  { %v480_v23 = vmul.f32 %v463_v58, %v461_v21  ;;  %590 = vpush %v475_v22 }
 0x246   :  { %v482_v25 = vsel %vm464_vm3, %v480_v23, 0.0 }
 0x247   :  { %v483_v0 = vadd.f32 %v482_v25, %v481_v24 }
 0x249   :  { %484 = vadd.xlane.f32.xlu0 %v483_v0 }
 0x24a   :  { %649 = shalt.err (!%p646_p9)
}
 0x24b   :  { %510 = dma.vmem_to_hbm [thread:$0]  %s505_s5, 256, %s891_s7, [#allocation5], %s695_s12, %s695_s12, %s696_s13  }
 0x24c   :  { %s658_s19 = scalar_lea.vmem %s518_s3, 32  ;;  %p663_p11 = scmp.lt.s32.totalorder %s518_s3, %s518_s3 }
 0x24d   :  { %p659_p10 = scmp.ne.s32.totalorder %s518_s3, %s658_s19  ;;  %p664_p12 = scmp.lt.s32.totalorder %s658_s19, %s658_s19 }
 0x24f   :  { %p665_p13 = por %p664_p12, %p663_p11 }
 0x251   :  { %p666_p0 = pnand %p665_p13, %p659_p10 }
 0x253   :  { %669 = shalt.err (!%p666_p0)
}
 0x254   :  { %520 = dma.vmem_to_hbm [thread:$0]  %s518_s3, 32, %s892_s8, [#allocation9]  }
 0x255   :  { %s703_s8 = smov [#allocation10]  }
 0x275   :  { %s591_s22 = spop %590 }
 0x276   :  { %p477_p1 = scmp.gt.f32.partialorder %s591_s22, 0.0 }
 0x278   :  { %s895_s22 = smov (!%p477_p1, %s591_s22), 1.0 }
 0x279   :  { %v493_v27 = vstv %s895_s22 }
 0x27a   :  { %616 = vrcp.f32 %v493_v27 }
 0x287   :  { %v617_v35 = vpop.eup %616 }
 0x2d2   :  { %v485_v28 = vpop.xlane.xlu0 %484 }
 0x2d3   :  { %v486_v29 = vrot.slane %v485_v28, 4 }
 0x2d5   :  { %v487_v30 = vadd.f32 %v486_v29, %v485_v28 }
 0x2d7   :  { %v488_v31 = vrot.slane %v487_v30, 2 }
 0x2d9   :  { %v489_v32 = vadd.f32 %v488_v31, %v487_v30 }
 0x2db   :  { %v490_v33 = vrot.slane %v489_v32, 1 }
 0x2dd   :  { %v491_v34 = vadd.f32 %v490_v33, %v489_v32 }
 0x2df   :  { %592 = vpush %v491_v34 }
 0x2e0   :  { %594 = vpush %v617_v35 }
 0x310   :  { %s593_s7 = spop %592 }
 0x311   :  { %s595_s12 = spop %594 }
 0x312   :  { %s496_s13 = smul.f32 %s595_s12, %s593_s7 }
 0x314   :  { %498 = sst [smem:[#allocation10]] %s496_s13 }
 0x315   :  { %528 = dma.smem_to_hbm %s703_s8, 16, %s893_s9, [#allocation6]  }
 0x316   :  { %688 = dma.done.wait [#allocation5], 256  }
 0x317   :  { %689 = vsyncadd [#allocation5], 4294967040 }
 0x318   :  { %690 = dma.done.wait [#allocation9], 32  }
 0x319   :  { %691 = vsyncadd [#allocation9], 4294967264 }
 0x31a   :  { %692 = dma.done.wait [#allocation6], 16  }
 0x31b   :  { %693 = vsyncadd [#allocation6], 4294967280 }
 0x31c   :  { %538 = sfence }
 0x31d   :  { %539 = vsyncpa [#allocation4], 1 }
 0x31e   :  { %540 = vsyncpa [#allocation5], 1 }
 0x31f   :  { %541 = vsyncpa [#allocation9], 1 }
 0x320   :  { %542 = vsyncpa [#allocation6], 1 }

</bundles_post_ra>
